<compile_context>
chip_gen: v7x
topology: tpu7x:2x2x1
jax: 0.10.0
libtpu: 0.0.40
codegen_flags: <defaults>
</compile_context>

<pallas_src>
import functools

import jax
import jax.numpy as jnp
from jax import lax
from jax.experimental import pallas as pl
from jax.experimental.pallas import tpu as pltpu


def _round_up(x, m):
    return ((x + m - 1) // m) * m


def edge_score_kernel(si_ref, di_ref, hs_t_ref, hd_t_ref, b_ref, out_ref, *, n_pad):
    """One edge tile: MXU one-hot gather of per-node projections, lane-dense store.

    si_ref, di_ref : [1, tile]       int32 edge endpoints for this tile (VMEM block)
    hs_t_ref       : [C_pad, n_pad]  bf16  (W_src @ h.T), resident
    hd_t_ref       : [C_pad, n_pad]  bf16  (W_dst @ h.T), resident
    b_ref          : [C_pad, 1]      f32   bias, resident
    out_ref        : [C_pad, tile]   f32   transposed scores (lane-dense)
    """
    tile = out_ref.shape[1]
    node_iota = lax.broadcasted_iota(jnp.int32, (n_pad, tile), 0)
    onehot_s = (node_iota == si_ref[...]).astype(jnp.bfloat16)   # [n_pad, tile]
    onehot_d = (node_iota == di_ref[...]).astype(jnp.bfloat16)   # [n_pad, tile]

    # Gather == matmul against the one-hot selection matrices (bf16 operands,
    # f32 accumulate). The selection is exact; only the bf16 rounding of the
    # precomputed projections contributes error.
    acc = jnp.dot(hs_t_ref[...], onehot_s, preferred_element_type=jnp.float32)
    acc = acc + jnp.dot(hd_t_ref[...], onehot_d, preferred_element_type=jnp.float32)
    out_ref[...] = acc + b_ref[...]


def hetero_mlp_predictor(h, src_idx, dst_idx, W, b, *, tile_e=2048):
    """Equivalent of HeteroMLPPredictor.forward.

    h:   [N, D] node features (f32)
    src_idx, dst_idx: [E] int32 edge endpoints
    W:   [C, 2*D]  (PyTorch nn.Linear weight)
    b:   [C]       (PyTorch nn.Linear bias)
    returns score: [E, C] (f32)
    """
    N, D = h.shape
    C = W.shape[0]
    assert W.shape[1] == 2 * D
    E = src_idx.shape[0]

    C_pad = _round_up(C, 8)
    N_pad = _round_up(N, 128)

    # --- node-projection refactor (done once, f32, then bf16 for the kernel) ---
    W_src = W[:, :D].astype(jnp.float32)
    W_dst = W[:, D:].astype(jnp.float32)
    hf = h.astype(jnp.float32)
    hs_t = jnp.dot(W_src, hf.T, precision=lax.Precision.HIGHEST)   # [C, N]
    hd_t = jnp.dot(W_dst, hf.T, precision=lax.Precision.HIGHEST)   # [C, N]
    hs_t = jnp.pad(hs_t, ((0, C_pad - C), (0, N_pad - N))).astype(jnp.bfloat16)
    hd_t = jnp.pad(hd_t, ((0, C_pad - C), (0, N_pad - N))).astype(jnp.bfloat16)
    b2 = jnp.pad(b.astype(jnp.float32), (0, C_pad - C)).reshape(C_pad, 1)

    # --- edge tiling: lane-dense (tile % 128 == 0); keep >=2 grid steps when
    # there are enough edges so both v7x TensorCores get work. Ragged E handled
    # by padding the index arrays (padded edges gather node 0, sliced off). ---
    tile = min(tile_e, _round_up(max(E, 128), 128))
    if E > 256:
        tile = min(tile, _round_up((E + 1) // 2, 128))
    tile = max(tile, 128)
    e_pad = _round_up(E, tile)
    pad = e_pad - E
    si = jnp.pad(src_idx.astype(jnp.int32), (0, pad)).reshape(1, e_pad)
    di = jnp.pad(dst_idx.astype(jnp.int32), (0, pad)).reshape(1, e_pad)

    grid = (e_pad // tile,)

    # --- VMEM budget derived from the actual footprint (not a fixed number);
    # clamp to [16 MiB, 64 MiB] so it is safe on every generation incl. v7x. ---
    onehot_bytes = 2 * N_pad * tile * 2 + N_pad * tile * 4        # bf16 one-hots + i32 iota
    acc_bytes = 2 * C_pad * tile * 4                              # f32 accumulators
    io_bytes = 2 * (2 * tile * 4) + 2 * (C_pad * tile * 4)        # dbl-buffered idx + out blocks
    resident_bytes = 2 * (2 * C_pad * N_pad * 2 + C_pad * 4)      # projections + bias
    vmem_limit = min(64 * 1024 * 1024,
                     max(4 * (onehot_bytes + acc_bytes + io_bytes + resident_bytes),
                         16 * 1024 * 1024))

    flops = 2 * (2 * C_pad * N_pad * e_pad)                       # two one-hot matmuls
    bytes_accessed = (2 * e_pad * 4                               # edge indices
                      + C_pad * e_pad * 4                         # output scores
                      + 2 * C_pad * N_pad * 2 + C_pad * 4)        # resident projections + bias

    out_t = pl.pallas_call(
        functools.partial(edge_score_kernel, n_pad=N_pad),
        out_shape=jax.ShapeDtypeStruct((C_pad, e_pad), jnp.float32),
        grid_spec=pltpu.PrefetchScalarGridSpec(
            num_scalar_prefetch=0,
            grid=grid,
            in_specs=[
                pl.BlockSpec((1, tile), lambda i: (0, i)),         # src indices tile
                pl.BlockSpec((1, tile), lambda i: (0, i)),         # dst indices tile
                pl.BlockSpec((C_pad, N_pad), lambda i: (0, 0)),    # hsT resident
                pl.BlockSpec((C_pad, N_pad), lambda i: (0, 0)),    # hdT resident
                pl.BlockSpec((C_pad, 1), lambda i: (0, 0)),        # bias resident
            ],
            out_specs=pl.BlockSpec((C_pad, tile), lambda i: (0, i)),
        ),
        compiler_params=pltpu.CompilerParams(
            dimension_semantics=("parallel",),
            vmem_limit_bytes=vmem_limit,
        ),
        cost_estimate=pl.CostEstimate(
            flops=flops,
            transcendentals=0,
            bytes_accessed=bytes_accessed,
        ),
    )(si, di, hs_t, hd_t, b2)

    # Lane-dense [C_pad, e_pad] slab -> [E, C] scores.
    return out_t[:C, :E].T


if __name__ == "__main__":
    key = jax.random.PRNGKey(0)
    k_h, k_w, k_b, k_src, k_dst = jax.random.split(key, 5)

    # Small synthetic graph: 64 nodes, 1000 edges (ragged vs. the 512 tile, and a
    # multi-step parallel grid), in_dims=32, n_classes=8.
    num_nodes = 64
    num_edges = 1000
    in_dims = 32
    n_classes = 8

    h = jax.random.normal(k_h, (num_nodes, in_dims), dtype=jnp.float32)
    src_idx = jax.random.randint(k_src, (num_edges,), 0, num_nodes, dtype=jnp.int32)
    dst_idx = jax.random.randint(k_dst, (num_edges,), 0, num_nodes, dtype=jnp.int32)

    # Deterministic nn.Linear(in_dims*2, n_classes) parameters.
    bound = 1.0 / jnp.sqrt(2.0 * in_dims)
    W = jax.random.uniform(k_w, (n_classes, 2 * in_dims), jnp.float32, -bound, bound)
    b = jax.random.uniform(k_b, (n_classes,), jnp.float32, -bound, bound)

    score = hetero_mlp_predictor(h, src_idx, dst_idx, W, b)
    score = jax.block_until_ready(score)

    # Reference check (pure JAX f32, same semantics as the torch module).
    x = jnp.concatenate([h[src_idx], h[dst_idx]], axis=1)
    ref = x @ W.T + b
    assert score.shape == (num_edges, n_classes)
    # Projections are rounded to bf16 before the (exact) one-hot gather:
    # tolerance relaxed vs the f32 reference (documented precision trade-off).
    assert jnp.allclose(score, ref, atol=2e-2, rtol=2e-2)

    print("KERNEL_OK")
</pallas_src>

<mosaic_0001>
module attributes {stable_mosaic.version = 11 : i64} {
  func.func @edge_score_kernel(%arg0: i32, %arg1: memref<1x512xi32, #tpu.memory_space<vmem>>, %arg2: memref<1x512xi32, #tpu.memory_space<vmem>>, %arg3: memref<8x128xbf16, #tpu.memory_space<vmem>>, %arg4: memref<8x128xbf16, #tpu.memory_space<vmem>>, %arg5: memref<8x1xf32, #tpu.memory_space<vmem>>, %arg6: memref<8x512xf32, #tpu.memory_space<vmem>>) attributes {dimension_semantics = [#tpu.dimension_semantics<parallel>], iteration_bounds = array<i64: 2>, scalar_prefetch = 0 : i64, scratch_operands = 0 : i64, tpu.core_type = #tpu.core_type<tc>, window_params = [{transform_indices = @transform_0, window_bounds = array<i64: 1, 512>}, {transform_indices = @transform_1, window_bounds = array<i64: 1, 512>}, {pipeline_mode = #tpu.pipeline_mode<synchronous>, transform_indices = @transform_2, window_bounds = array<i64: 8, 128>}, {pipeline_mode = #tpu.pipeline_mode<synchronous>, transform_indices = @transform_3, window_bounds = array<i64: 8, 128>}, {pipeline_mode = #tpu.pipeline_mode<synchronous>, transform_indices = @transform_4, window_bounds = array<i64: 8, 1>}, {transform_indices = @transform_5, window_bounds = array<i64: 8, 512>}]} {
    %0 = tpu.iota {dimensions = array<i32: 0>} : vector<128x512xi32>
    %c0 = arith.constant 0 : index
    %c0_0 = arith.constant 0 : index
    %1 = vector.load %arg1[%c0, %c0_0] : memref<1x512xi32, #tpu.memory_space<vmem>>, vector<1x512xi32>
    %2 = vector.broadcast %1 : vector<1x512xi32> to vector<128x512xi32>
    %3 = arith.cmpi eq, %0, %2 : vector<128x512xi32>
    %4 = arith.extui %3 : vector<128x512xi1> to vector<128x512xi32>
    %5 = arith.sitofp %4 : vector<128x512xi32> to vector<128x512xf32>
    %6 = arith.truncf %5 : vector<128x512xf32> to vector<128x512xbf16>
    %c0_1 = arith.constant 0 : index
    %c0_2 = arith.constant 0 : index
    %7 = vector.load %arg2[%c0_1, %c0_2] : memref<1x512xi32, #tpu.memory_space<vmem>>, vector<1x512xi32>
    %8 = vector.broadcast %7 : vector<1x512xi32> to vector<128x512xi32>
    %9 = arith.cmpi eq, %0, %8 : vector<128x512xi32>
    %10 = arith.extui %9 : vector<128x512xi1> to vector<128x512xi32>
    %11 = arith.sitofp %10 : vector<128x512xi32> to vector<128x512xf32>
    %12 = arith.truncf %11 : vector<128x512xf32> to vector<128x512xbf16>
    %c0_3 = arith.constant 0 : index
    %c0_4 = arith.constant 0 : index
    %13 = vector.load %arg3[%c0_3, %c0_4] : memref<8x128xbf16, #tpu.memory_space<vmem>>, vector<8x128xbf16>
    %cst = arith.constant dense<0.000000e+00> : vector<8x512xf32>
    %14 = tpu.matmul %13, %6, %cst {dimension_numbers = #tpu.dot_dimension_numbers<[1], [0], [0], [1], [0, 0, 1, 1], [], []>} : vector<8x128xbf16>, vector<128x512xbf16>, vector<8x512xf32> -> vector<8x512xf32>
    %c0_5 = arith.constant 0 : index
    %c0_6 = arith.constant 0 : index
    %15 = vector.load %arg4[%c0_5, %c0_6] : memref<8x128xbf16, #tpu.memory_space<vmem>>, vector<8x128xbf16>
    %cst_7 = arith.constant dense<0.000000e+00> : vector<8x512xf32>
    %16 = tpu.matmul %15, %12, %cst_7 {dimension_numbers = #tpu.dot_dimension_numbers<[1], [0], [0], [1], [0, 0, 1, 1], [], []>} : vector<8x128xbf16>, vector<128x512xbf16>, vector<8x512xf32> -> vector<8x512xf32>
    %17 = arith.addf %14, %16 : vector<8x512xf32>
    %c0_8 = arith.constant 0 : index
    %c0_9 = arith.constant 0 : index
    %18 = vector.load %arg5[%c0_8, %c0_9] : memref<8x1xf32, #tpu.memory_space<vmem>>, vector<8x1xf32>
    %19 = vector.broadcast %18 : vector<8x1xf32> to vector<8x512xf32>
    %20 = arith.addf %17, %19 : vector<8x512xf32>
    %c0_10 = arith.constant 0 : index
    %c0_11 = arith.constant 0 : index
    %21 = vector.load %arg6[%c0_10, %c0_11] : memref<8x512xf32, #tpu.memory_space<vmem>>, vector<8x512xf32>
    tpu.vector_store %arg6[%c0_10, %c0_11], %20 {strides = array<i32>} : memref<8x512xf32, #tpu.memory_space<vmem>>, vector<8x512xf32>,
    return
  }
  func.func @transform_0(%arg0: i32) -> (i32, i32) {
    %c0_i32 = arith.constant 0 : i32
    %c0_i32_0 = arith.constant 0 : i32
    return %c0_i32, %arg0 : i32, i32
  }
  func.func @transform_1(%arg0: i32) -> (i32, i32) {
    %c0_i32 = arith.constant 0 : i32
    %c0_i32_0 = arith.constant 0 : i32
    return %c0_i32, %arg0 : i32, i32
  }
  func.func @transform_2(%arg0: i32) -> (i32, i32) {
    %c0_i32 = arith.constant 0 : i32
    %c0_i32_0 = arith.constant 0 : i32
    %c0_i32_1 = arith.constant 0 : i32
    return %c0_i32, %c0_i32_0 : i32, i32
  }
  func.func @transform_3(%arg0: i32) -> (i32, i32) {
    %c0_i32 = arith.constant 0 : i32
    %c0_i32_0 = arith.constant 0 : i32
    %c0_i32_1 = arith.constant 0 : i32
    return %c0_i32, %c0_i32_0 : i32, i32
  }
  func.func @transform_4(%arg0: i32) -> (i32, i32) {
    %c0_i32 = arith.constant 0 : i32
    %c0_i32_0 = arith.constant 0 : i32
    %c0_i32_1 = arith.constant 0 : i32
    return %c0_i32, %c0_i32_0 : i32, i32
  }
  func.func @transform_5(%arg0: i32) -> (i32, i32) {
    %c0_i32 = arith.constant 0 : i32
    %c0_i32_0 = arith.constant 0 : i32
    return %c0_i32, %arg0 : i32, i32
  }
}

</mosaic_0001>

<bundles_post_ra>
// kernel: tpu_custom_call.1
= control target key start
LH: loop header
LB: loop body
LE: loop exit
PB: predicated region body
PF: predicated region fallthrough
CT: control target
= control target key end

     0   :  { %10 = vsyncpa [#allocation3], 0  ;;  %s2086_s0 = inlined_call_operand.vmem [shape: s32[1,1024], index: 0, kind: input, shape index: {}]   ;;  %s2087_s1 = inlined_call_operand.hbm [shape: s32[1,1024], index: 1, kind: input, shape index: {}]   ;;  %s2088_s2 = inlined_call_operand.vmem [shape: bf16[8,128], index: 2, kind: input, shape index: {}]   ;;  %s2089_s3 = inlined_call_operand.vmem [shape: bf16[8,128], index: 3, kind: input, shape index: {}]   ;;  %s2090_s4 = inlined_call_operand.vmem [shape: f32[8,1], index: 4, kind: input, shape index: {}]   ;;  %s2091_s5 = inlined_call_operand.hbm [shape: f32[8,1024], index: 5, kind: output, shape index: {}]  }
   0x1   :  { %12 = vsyncpa [#allocation3 + $0x1], 0 }
   0x2   :  { %13 = vsyncpa [#allocation4], 0 }
   0x3   :  { %15 = vsyncpa [#allocation4 + $0x1], 0  ;;  %s1490_s18 = smov 0   ;;  %s1492_s19 = smov 0  }
   0x4   :  { %s1494_s20 = smov 0   ;;  %s1496_s21 = smov 0  }
   0x5 LB: > { %s1511_s22 = sadd.s32 4294967295, %s1454_s21   ;;  %s1036_s23 = sadd.s32 4294967294, %s1454_s21   ;;  %s1454_s21 = sphi %s1496_s21, %s2107_s21   ;;  %s1450_s20 = sphi %s1494_s20, %s2106_s20   ;;  %s1446_s19 = sphi %s1492_s19, %s2105_s19   ;;  %s1442_s18 = sphi %s1490_s18, %s2104_s18  }
   0x6   : > { %s1515_s24 = sadd.s32 1, %s1454_s21   ;;  %s54_s25 = sadd.s32 1, %s1450_s20 }
   0x7   : > { %s51_s26 = ssub.s32 %s1454_s21, %s1515_s24  ;;  %p61_p0 = scmp.ne.s32.totalorder %s1450_s20, %s1446_s19 }
   0x8   : > { %p52_p1 = scmp.eq.s32.totalorder %s51_s26, 0  ;;  %p62_p2 = scmp.eq.s32.totalorder %s1454_s21, 0 }
   0x9   : > { %p67_p3 = scmp.ne.s32.totalorder %s1446_s19, %s1442_s18  ;;  %p68_p4 = scmp.eq.s32.totalorder %s1511_s22, 0 }
   0xa   : > { %s1527_s27 = scalar_select %p52_p1, %s1450_s20, %s54_s25  }
   0xb   : > { %p1529_p5 = por %p62_p2, %p61_p0  ;;  %p1533_p6 = por %p68_p4, %p67_p3 }
   0xc   : > { %p154_p7 = scmp.eq.s32.totalorder %s1511_s22, 1  ;;  %p160_p8 = scmp.eq.s32.totalorder %s1036_s23, 1 }
   0xd   : > { %p1321_p10 = scmp.lt.s32.totalorder %s1454_s21, 2  ;;  %s197_s7 = sand.u32 1, %s1450_s20  }
   0xe   : > { %p1540_p11 = por %p154_p7, %p61_p0  ;;  %p1544_p12 = por %p160_p8, %p67_p3 }
   0xf   : > { %s1307_s8 = sshll.u32 %s1454_s21, 6  ;;  %s1039_s9 = sshll.u32 %s197_s7, 2 }
  0x10   : > { %s2095_s30 = scalar_select %p1540_p11, 1, 0 }
  0x11   : > { %s2096_s6 = scalar_select %p1544_p12, 1, 0 }
  0x12   : > { %s1553_s12 = scalar_lea.hbm %s2087_s1, %s1307_s8  ;;  %s201_s13 = scalar_lea.vmem [#allocation2], %s1039_s9 }
  0x13   : > { %s209_s14 = sshll.u32 %s201_s13, 4  ;;  %p1557_p13 = pnand %p1321_p10, %p1529_p5  ;;  %s1561_s14 = int_to_ptr.vmem [resolvable:$true] %s209_s14 }
  0x14   : > { %s198_s16 = scalar_lea.sflag [#allocation3], %s197_s7  ;;  %s1358_s17 = scalar_lea.hbm %s1553_s12, 64 }
  0x15   : > { %p1359_p2 = scmp.ne.s32.totalorder %s1553_s12, %s1358_s17  ;;  %p1360_p3 = pneg %p1557_p13 }
  0x16   : > { %s1363_s26 = scalar_lea.hbm %s2087_s1, 128  ;;  %p1364_p5 = scmp.lt.u32.totalorder %s1553_s12, %s2087_s1 }
  0x17   : > { %p1361_p4 = pnand %p1360_p3, %p1359_p2  ;;  %p1365_p8 = scmp.lt.u32.totalorder %s1363_s26, %s1358_s17 }
  0x18   : > { %p1367_p9 = scmp.lt.u32.totalorder %s1358_s17, %s1553_s12 }
  0x19   : > { %p1362_p7 = pneg %p1361_p4  ;;  %p1366_p10 = por %p1365_p8, %p1364_p5 }
  0x1b   : > { %p1368_p0 = por %p1367_p9, %p1366_p10 }
  0x1d   : > { %p1369_p1 = pnand %p1368_p0, %p1362_p7 }
  0x1f   : > { %1372 = shalt.err (!%p1369_p1)
}
  0x20   : > { %s1373_s7 = scalar_lea.vmem %s1561_s14, 64  ;;  %s1456_s9 = smov [#allocation2]  }
  0x21   : > { %p1374_p2 = scmp.ne.s32.totalorder %s1561_s14, %s1373_s7  ;;  %s1378_s10 = sshll.u32 %s1456_s9, 4  ;;  %s1379_s10 = int_to_ptr.vmem [resolvable:$false] %s1378_s10 }
  0x22   : > { %s1380_s11 = scalar_lea.vmem %s1379_s10, 128  ;;  %p1381_p11 = scmp.lt.s32.totalorder %s1561_s14, %s1379_s10 }
  0x23   : > { %p1376_p4 = pnand %p1374_p2, %p1360_p3  ;;  %p1382_p5 = scmp.lt.s32.totalorder %s1380_s11, %s1373_s7 }
  0x25   : > { %p1377_p12 = pneg %p1376_p4  ;;  %p1383_p8 = por %p1382_p5, %p1381_p11 }
  0x27   : > { %p1384_p9 = pnand %p1383_p8, %p1377_p12 }
  0x29   : > { %1387 = shalt.err (!%p1384_p9)
}
  0x2a   : > { %1316 = dma.hbm_to_vmem [thread:$0]  (!%p1557_p13), %s1553_s12, 64, %s1561_s14, %s198_s16  }
  0x2b   : > { %p2098_p0 = scmp.lt.s32.totalorder %s1454_s21, 3  ;;  %p2099_p1 = scmp.ge.s32.totalorder %s1454_s21, 1 }
  0x2d   : > { %p215_p3 = pnand %p2099_p1, %p2098_p0 }
  0x2e   : > { %s1595_s13 = sand.u32 (!%p215_p3), 1, %s1446_s19  }
  0x2f   : > { %218 = sbr.rel (%p215_p3) target bundleno = 362 (0x16a), region = 40  ;;  %s1043_s17 = sshll.u32 (!%p215_p3), %s1595_s13, 2 }
  0x30   : > { %s221_s23 = scalar_lea.sflag (!%p215_p3), [#allocation3], %s1595_s13  ;;  %s224_s25 = scalar_lea.vmem (!%p215_p3), [#allocation2], %s1043_s17 }
  0x36   : > { %1433 = dma.done.wait (%p1533_p6), %s221_s23, 64  }
  0x37   : > { %1435 = vsyncadd (%p1533_p6), %s221_s23, 4294967232  ;;  %v263_v0 = vlaneseq  ;;  %v1457_v1 = vmov 0   ;;  %v521_v8 = vld [vmem:[%s224_s25] sm:$0xf]  ;;  %v1458_v16 = vmov 1.0|1.0  }
  0x38   : > { %796 = vmatprep.mubr.bf16.mxu0 %v1457_v1  ;;  %837 = vmatprep.mubr.bf16.mxu1 %v1457_v1  ;;  %v928_v15 = vld [vmem:[%s2090_s4] sm:$0xff]  ;;  %s1045_s14 = sshll.u32 %s1511_s22, 2  ;;  %s1044_s11 = sshll.u32 %s1595_s13, 5 }
  0x39   : > { %v1605_v2 = vshrl.u32 %v263_v0, 7  ;;  %1357 = vset.pattern.permute.xlu0 %v1457_v1  ;;  %p1732_p6 = scmp.lt.s32.totalorder %s1045_s14, 7  ;;  %v763_v34 = vld [vmem:[%s2089_s3] sm:$0xf]  ;;  %s1308_s17 = sshll.u32 %s1511_s22, 9 }
  0x3a   : > { %931 = vperm.xlu0 %1357, %v928_v15   ;;  %v762_v35 = vld [vmem:[%s2088_s2] sm:$0xf]  ;;  %s254_s23 = scalar_lea.vmem [#allocation5], %s1044_s11  ;;  %s943_s22 = scalar_lea.sflag [#allocation4], %s1595_s13 }
  0x3b   : > { %v287_v3 = vsub.s32 1, %v1605_v2  ;;  %v295_v4 = vsub.s32 3, %v1605_v2  ;;  %v283_v5 = vsub.s32 0, %v1605_v2  ;;  %v291_v6 = vsub.s32 2, %v1605_v2  ;;  %s2109_s14 = smov (!%p1732_p6, %s1045_s14), 7  ;;  %s957_s25 = sshll.u32 %s254_s23, 4  ;;  %s2044_s25 = int_to_ptr.vmem [resolvable:$true] %s957_s25 }
  0x3c   : > { %v1613_v7 = vadd.s32 8, %v1605_v2  ;;  %v1616_v9 = vadd.s32 16, %v1605_v2  ;;  %v1619_v10 = vadd.s32 24, %v1605_v2  ;;  %v1662_v17 = vadd.s32 32, %v1605_v2  ;;  %s258_s28 = scalar_lea.vmem %s2086_s0, %s2109_s14  ;;  %s2042_s14 = scalar_lea.hbm %s2091_s5, %s1308_s17 }
  0x3d   : > { %v1623_v11 = vrot.slane %v521_v8, %v287_v3  ;;  %v1627_v12 = vrot.slane %v521_v8, %v295_v4  ;;  %v1631_v13 = vrot.slane %v521_v8, %v283_v5  ;;  %v1635_v14 = vrot.slane %v521_v8, %v291_v6  ;;  %v280_v29 = vld [vmem:[%s258_s28] sm:$0xf]  ;;  %s1388_s15 = scalar_lea.vmem %s2044_s25, 512  ;;  %p2101_p12 = scmp.ne.s32.totalorder %s2095_s30, 0 }
  0x3e   : > { %v1665_v18 = vadd.s32 40, %v1605_v2  ;;  %v1688_v19 = vadd.s32 48, %v1605_v2  ;;  %v1691_v20 = vadd.s32 56, %v1605_v2  ;;  %v1715_v21 = vadd.s32 64, %v1605_v2  ;;  %p1389_p11 = scmp.ne.s32.totalorder %s2044_s25, %s1388_s15  ;;  %s1459_s16 = smov [#allocation5]  }
  0x3f   : > { %vm539_vm0 = vcmp.eq.s32.totalorder %v1605_v2, %v1623_v11  ;;  %vm543_vm1 = vcmp.eq.s32.totalorder %v1613_v7, %v1623_v11  ;;  %vm541_vm2 = vcmp.eq.s32.totalorder %v1605_v2, %v1627_v12  ;;  %vm545_vm3 = vcmp.eq.s32.totalorder %v1613_v7, %v1627_v12  ;;  %s1392_s26 = sshll.u32 %s1459_s16, 4  ;;  %s1393_s26 = int_to_ptr.vmem [resolvable:$false] %s1392_s26 }
  0x40   : > { %vm1174_vm4 = vmpackc.low %vm543_vm1, %vm539_vm0  ;;  %vm538_vm5 = vcmp.eq.s32.totalorder %v1605_v2, %v1631_v13  ;;  %vm542_vm6 = vcmp.eq.s32.totalorder %v1613_v7, %v1631_v13  ;;  %vm540_vm7 = vcmp.eq.s32.totalorder %v1605_v2, %v1635_v14  ;;  %vm544_vm8 = vcmp.eq.s32.totalorder %v1613_v7, %v1635_v14  ;;  %p1390_p13 = pnand %p1389_p11, %p2101_p12  ;;  %s1394_s28 = scalar_lea.vmem %s1393_s26, 1024 }
  0x41   : > { %1175 = vmatprep.subr.msk.bf16.mxu0 %vm1174_vm4, %v1458_v16  ;;  %vm1206_vm9 = vmpackc.low %vm545_vm3, %vm541_vm2  ;;  %vm547_vm10 = vcmp.eq.s32.totalorder %v1616_v9, %v1623_v11  ;;  %vm551_vm11 = vcmp.eq.s32.totalorder %v1619_v10, %v1623_v11  ;;  %vm549_vm13 = vcmp.eq.s32.totalorder %v1616_v9, %v1627_v12  ;;  %vm553_vm14 = vcmp.eq.s32.totalorder %v1619_v10, %v1627_v12  ;;  %p1395_p10 = scmp.lt.s32.totalorder %s2044_s25, %s1393_s26  ;;  %p1396_p2 = scmp.lt.s32.totalorder %s1394_s28, %s1388_s15 }
  0x42   : > { %1207 = vmatprep.subr.msk.bf16.mxu1 %vm1206_vm9, %v1458_v16  ;;  %vm1176_vm12 = vmpackc.low %vm542_vm6, %vm538_vm5  ;;  %vm546_vm0 = vcmp.eq.s32.totalorder %v1616_v9, %v1631_v13  ;;  %vm550_vm1 = vcmp.eq.s32.totalorder %v1619_v10, %v1631_v13  ;;  %vm548_vm3 = vcmp.eq.s32.totalorder %v1616_v9, %v1635_v14  ;;  %vm552_vm4 = vcmp.eq.s32.totalorder %v1619_v10, %v1635_v14  ;;  %p1391_p7 = pneg %p1390_p13 }
  0x43   : > { %1177 = vmatpush1.bf16.msk.msra.mxu0 %vm1176_vm12, %v1458_v16  ;;  %vm1208_vm15 = vmpackc.low %vm544_vm8, %vm540_vm7  ;;  %vm555_vm6 = vcmp.eq.s32.totalorder %v1662_v17, %v1623_v11  ;;  %vm559_vm7 = vcmp.eq.s32.totalorder %v1665_v18, %v1623_v11  ;;  %vm557_vm9 = vcmp.eq.s32.totalorder %v1662_v17, %v1627_v12  ;;  %vm554_vm12 = vcmp.eq.s32.totalorder %v1662_v17, %v1631_v13  ;;  %p1397_p4 = por %p1396_p2, %p1395_p10 }
  0x44   : > { %1209 = vmatpush1.bf16.msk.msra.mxu1 %vm1208_vm15, %v1458_v16  ;;  %vm1178_vm2 = vmpackc.low %vm551_vm11, %vm547_vm10  ;;  %vm561_vm10 = vcmp.eq.s32.totalorder %v1665_v18, %v1627_v12  ;;  %vm556_vm15 = vcmp.eq.s32.totalorder %v1662_v17, %v1635_v14  ;;  %v1718_v22 = vadd.s32 72, %v1605_v2  ;;  %v1747_v23 = vadd.s32 80, %v1605_v2 }
  0x45   : > { %1179 = vmatprep.subr.msk.bf16.mxu0 %vm1178_vm2, %v1458_v16  ;;  %vm1210_vm5 = vmpackc.low %vm553_vm14, %vm549_vm13  ;;  %vm558_vm13 = vcmp.eq.s32.totalorder %v1665_v18, %v1631_v13  ;;  %vm563_vm2 = vcmp.eq.s32.totalorder %v1688_v19, %v1623_v11  ;;  %v1750_v24 = vadd.s32 88, %v1605_v2  ;;  %v1779_v25 = vadd.s32 96, %v1605_v2  ;;  %p1398_p5 = pnand %p1397_p4, %p1391_p7 }
  0x46   : > { %1211 = vmatprep.subr.msk.bf16.mxu1 %vm1210_vm5, %v1458_v16  ;;  %vm1180_vm8 = vmpackc.low %vm550_vm1, %vm546_vm0  ;;  %vm560_vm0 = vcmp.eq.s32.totalorder %v1665_v18, %v1635_v14  ;;  %vm565_vm5 = vcmp.eq.s32.totalorder %v1688_v19, %v1627_v12  ;;  %v1782_v26 = vadd.s32 104, %v1605_v2  ;;  %v1809_v27 = vadd.s32 112, %v1605_v2 }
  0x47   : > { %1181 = vmatpush1.bf16.msk.msra.mxu0 %vm1180_vm8, %v1458_v16  ;;  %vm1212_vm11 = vmpackc.low %vm552_vm4, %vm548_vm3  ;;  %vm567_vm3 = vcmp.eq.s32.totalorder %v1691_v20, %v1623_v11  ;;  %vm562_vm8 = vcmp.eq.s32.totalorder %v1688_v19, %v1631_v13  ;;  %v1812_v28 = vadd.s32 120, %v1605_v2  ;;  %v1836_v30 = vrot.slane %v280_v29, %v287_v3 }
  0x48   : > { %1213 = vmatpush1.bf16.msk.msra.mxu1 %vm1212_vm11, %v1458_v16  ;;  %vm1182_vm14 = vmpackc.low %vm559_vm7, %vm555_vm6  ;;  %vm569_vm6 = vcmp.eq.s32.totalorder %v1691_v20, %v1627_v12  ;;  %vm564_vm11 = vcmp.eq.s32.totalorder %v1688_v19, %v1635_v14  ;;  %v1845_v31 = vrot.slane %v280_v29, %v295_v4  ;;  %v1854_v32 = vrot.slane %v280_v29, %v283_v5 }
  0x49   : > { %1183 = vmatprep.subr.msk.bf16.mxu0 %vm1182_vm14, %v1458_v16  ;;  %vm1214_vm1 = vmpackc.low %vm561_vm10, %vm557_vm9  ;;  %vm566_vm9 = vcmp.eq.s32.totalorder %v1691_v20, %v1631_v13  ;;  %vm571_vm14 = vcmp.eq.s32.totalorder %v1715_v21, %v1623_v11  ;;  %v1863_v33 = vrot.slane %v280_v29, %v291_v6 }
  0x4a   : > { %1215 = vmatprep.subr.msk.bf16.mxu1 %vm1214_vm1, %v1458_v16  ;;  %vm1184_vm4 = vmpackc.low %vm558_vm13, %vm554_vm12  ;;  %vm568_vm12 = vcmp.eq.s32.totalorder %v1691_v20, %v1635_v14  ;;  %vm573_vm1 = vcmp.eq.s32.totalorder %v1715_v21, %v1627_v12 }
  0x4b   : > { %1185 = vmatpush1.bf16.msk.msra.mxu0 %vm1184_vm4, %v1458_v16  ;;  %vm1216_vm7 = vmpackc.low %vm560_vm0, %vm556_vm15  ;;  %vm575_vm15 = vcmp.eq.s32.totalorder %v1718_v22, %v1623_v11  ;;  %vm570_vm4 = vcmp.eq.s32.totalorder %v1715_v21, %v1631_v13 }
  0x4c   : > { %1217 = vmatpush1.bf16.msk.msra.mxu1 %vm1216_vm7, %v1458_v16  ;;  %vm1186_vm10 = vmpackc.low %vm567_vm3, %vm563_vm2  ;;  %vm577_vm2 = vcmp.eq.s32.totalorder %v1718_v22, %v1627_v12  ;;  %vm572_vm7 = vcmp.eq.s32.totalorder %v1715_v21, %v1635_v14 }
  0x4d   : > { %1187 = vmatprep.subr.msk.bf16.mxu0 %vm1186_vm10, %v1458_v16  ;;  %vm1218_vm13 = vmpackc.low %vm569_vm6, %vm565_vm5  ;;  %vm574_vm5 = vcmp.eq.s32.totalorder %v1718_v22, %v1631_v13  ;;  %vm579_vm10 = vcmp.eq.s32.totalorder %v1747_v23, %v1623_v11 }
  0x4e   : > { %1219 = vmatprep.subr.msk.bf16.mxu1 %vm1218_vm13, %v1458_v16  ;;  %vm1188_vm0 = vmpackc.low %vm566_vm9, %vm562_vm8  ;;  %vm576_vm8 = vcmp.eq.s32.totalorder %v1718_v22, %v1635_v14  ;;  %vm581_vm13 = vcmp.eq.s32.totalorder %v1747_v23, %v1627_v12 }
  0x4f   : > { %1189 = vmatpush1.bf16.msk.msra.mxu0 %vm1188_vm0, %v1458_v16  ;;  %vm1220_vm3 = vmpackc.low %vm568_vm12, %vm564_vm11  ;;  %vm583_vm11 = vcmp.eq.s32.totalorder %v1750_v24, %v1623_v11  ;;  %vm578_vm0 = vcmp.eq.s32.totalorder %v1747_v23, %v1631_v13 }
  0x50   : > { %1221 = vmatpush1.bf16.msk.msra.mxu1 %vm1220_vm3, %v1458_v16  ;;  %vm1190_vm6 = vmpackc.low %vm575_vm15, %vm571_vm14  ;;  %vm585_vm14 = vcmp.eq.s32.totalorder %v1750_v24, %v1627_v12  ;;  %vm580_vm3 = vcmp.eq.s32.totalorder %v1747_v23, %v1635_v14 }
  0x51   : > { %1191 = vmatprep.subr.msk.bf16.mxu0 %vm1190_vm6, %v1458_v16  ;;  %vm1222_vm9 = vmpackc.low %vm577_vm2, %vm573_vm1  ;;  %vm582_vm1 = vcmp.eq.s32.totalorder %v1750_v24, %v1631_v13  ;;  %vm587_vm6 = vcmp.eq.s32.totalorder %v1779_v25, %v1623_v11 }
  0x52   : > { %1223 = vmatprep.subr.msk.bf16.mxu1 %vm1222_vm9, %v1458_v16  ;;  %vm1192_vm12 = vmpackc.low %vm574_vm5, %vm570_vm4  ;;  %vm584_vm4 = vcmp.eq.s32.totalorder %v1750_v24, %v1635_v14  ;;  %vm589_vm9 = vcmp.eq.s32.totalorder %v1779_v25, %v1627_v12 }
  0x53   : > { %1193 = vmatpush1.bf16.msk.msra.mxu0 %vm1192_vm12, %v1458_v16  ;;  %vm1224_vm15 = vmpackc.low %vm576_vm8, %vm572_vm7  ;;  %vm591_vm7 = vcmp.eq.s32.totalorder %v1782_v26, %v1623_v11  ;;  %vm586_vm12 = vcmp.eq.s32.totalorder %v1779_v25, %v1631_v13 }
  0x54   : > { %1225 = vmatpush1.bf16.msk.msra.mxu1 %vm1224_vm15, %v1458_v16  ;;  %vm1194_vm2 = vmpackc.low %vm583_vm11, %vm579_vm10  ;;  %vm593_vm10 = vcmp.eq.s32.totalorder %v1782_v26, %v1627_v12  ;;  %vm588_vm15 = vcmp.eq.s32.totalorder %v1779_v25, %v1635_v14 }
  0x55   : > { %1195 = vmatprep.subr.msk.bf16.mxu0 %vm1194_vm2, %v1458_v16  ;;  %vm1226_vm5 = vmpackc.low %vm585_vm14, %vm581_vm13  ;;  %vm590_vm13 = vcmp.eq.s32.totalorder %v1782_v26, %v1631_v13  ;;  %vm595_vm2 = vcmp.eq.s32.totalorder %v1809_v27, %v1623_v11 }
  0x56   : > { %1227 = vmatprep.subr.msk.bf16.mxu1 %vm1226_vm5, %v1458_v16  ;;  %vm1196_vm8 = vmpackc.low %vm582_vm1, %vm578_vm0  ;;  %vm592_vm0 = vcmp.eq.s32.totalorder %v1782_v26, %v1635_v14  ;;  %vm597_vm5 = vcmp.eq.s32.totalorder %v1809_v27, %v1627_v12 }
  0x57   : > { %1197 = vmatpush1.bf16.msk.msra.mxu0 %vm1196_vm8, %v1458_v16  ;;  %vm1228_vm11 = vmpackc.low %vm584_vm4, %vm580_vm3  ;;  %vm599_vm3 = vcmp.eq.s32.totalorder %v1812_v28, %v1623_v11  ;;  %vm594_vm8 = vcmp.eq.s32.totalorder %v1809_v27, %v1631_v13 }
  0x58   : > { %1229 = vmatpush1.bf16.msk.msra.mxu1 %vm1228_vm11, %v1458_v16  ;;  %vm1198_vm14 = vmpackc.low %vm591_vm7, %vm587_vm6  ;;  %vm601_vm6 = vcmp.eq.s32.totalorder %v1812_v28, %v1627_v12  ;;  %vm596_vm11 = vcmp.eq.s32.totalorder %v1809_v27, %v1635_v14 }
  0x59   : > { %1199 = vmatprep.subr.msk.bf16.mxu0 %vm1198_vm14, %v1458_v16  ;;  %vm1230_vm1 = vmpackc.low %vm593_vm10, %vm589_vm9  ;;  %vm598_vm9 = vcmp.eq.s32.totalorder %v1812_v28, %v1631_v13  ;;  %vm298_vm14 = vcmp.eq.s32.totalorder %v1605_v2, %v1836_v30 }
  0x5a   : > { %1231 = vmatprep.subr.msk.bf16.mxu1 %vm1230_vm1, %v1458_v16  ;;  %vm1200_vm4 = vmpackc.low %vm590_vm13, %vm586_vm12  ;;  %vm600_vm12 = vcmp.eq.s32.totalorder %v1812_v28, %v1635_v14  ;;  %vm300_vm1 = vcmp.eq.s32.totalorder %v1605_v2, %v1845_v31 }
  0x5b   : > { %1201 = vmatpush1.bf16.msk.msra.mxu0 %vm1200_vm4, %v1458_v16  ;;  %vm1232_vm7 = vmpackc.low %vm592_vm0, %vm588_vm15  ;;  %vm302_vm15 = vcmp.eq.s32.totalorder %v1613_v7, %v1836_v30  ;;  %vm297_vm4 = vcmp.eq.s32.totalorder %v1605_v2, %v1854_v32 }
  0x5c   : > { %1233 = vmatpush1.bf16.msk.msra.mxu1 %vm1232_vm7, %v1458_v16  ;;  %vm1202_vm10 = vmpackc.low %vm599_vm3, %vm595_vm2  ;;  %vm304_vm2 = vcmp.eq.s32.totalorder %v1613_v7, %v1845_v31  ;;  %vm299_vm7 = vcmp.eq.s32.totalorder %v1605_v2, %v1863_v33 }
  0x5d   : > { %1203 = vmatprep.subr.msk.bf16.mxu0 %vm1202_vm10, %v1458_v16  ;;  %vm1234_vm13 = vmpackc.low %vm601_vm6, %vm597_vm5  ;;  %vm301_vm5 = vcmp.eq.s32.totalorder %v1613_v7, %v1854_v32  ;;  %vm306_vm10 = vcmp.eq.s32.totalorder %v1616_v9, %v1836_v30 }
  0x5e   : > { %1235 = vmatprep.subr.msk.bf16.mxu1 %vm1234_vm13, %v1458_v16  ;;  %vm1204_vm0 = vmpackc.low %vm598_vm9, %vm594_vm8  ;;  %vm303_vm8 = vcmp.eq.s32.totalorder %v1613_v7, %v1863_v33  ;;  %vm308_vm13 = vcmp.eq.s32.totalorder %v1616_v9, %v1845_v31 }
  0x5f   : > { %1205 = vmatpush1.bf16.msk.msra.mxu0 %vm1204_vm0, %v1458_v16  ;;  %vm1236_vm3 = vmpackc.low %vm600_vm12, %vm596_vm11  ;;  %vm310_vm11 = vcmp.eq.s32.totalorder %v1619_v10, %v1836_v30  ;;  %vm305_vm0 = vcmp.eq.s32.totalorder %v1616_v9, %v1854_v32 }
  0x60   : > { %1237 = vmatpush1.bf16.msk.msra.mxu1 %vm1236_vm3, %v1458_v16  ;;  %vm1238_vm6 = vmpackc.low %vm302_vm15, %vm298_vm14  ;;  %vm312_vm14 = vcmp.eq.s32.totalorder %v1619_v10, %v1845_v31  ;;  %vm307_vm3 = vcmp.eq.s32.totalorder %v1616_v9, %v1863_v33 }
  0x61   : > { %1239 = vmatprep.subr.msk.bf16.mxu0 %vm1238_vm6, %v1458_v16  ;;  %vm1270_vm9 = vmpackc.low %vm304_vm2, %vm300_vm1  ;;  %vm309_vm1 = vcmp.eq.s32.totalorder %v1619_v10, %v1854_v32  ;;  %vm314_vm6 = vcmp.eq.s32.totalorder %v1662_v17, %v1836_v30 }
  0x62   : > { %797 = vmatmul.mubr.bf16.vlgmr.msra.gmra.mrb[0].mxu0 %v763_v34  ;;  %1271 = vmatprep.subr.msk.bf16.mxu1 %vm1270_vm9, %v1458_v16  ;;  %vm1240_vm12 = vmpackc.low %vm301_vm5, %vm297_vm4  ;;  %vm311_vm4 = vcmp.eq.s32.totalorder %v1619_v10, %v1863_v33  ;;  %vm316_vm9 = vcmp.eq.s32.totalorder %v1662_v17, %v1845_v31 }
  0x63   : > { %838 = vmatmul.mubr.bf16.vlgmr.msra.gmra.mrb[0].mxu1 %v763_v34  ;;  %1241 = vmatpush1.bf16.msk.msra.mxu0 %vm1240_vm12, %v1458_v16  ;;  %vm1272_vm15 = vmpackc.low %vm303_vm8, %vm299_vm7  ;;  %vm318_vm7 = vcmp.eq.s32.totalorder %v1665_v18, %v1836_v30  ;;  %vm313_vm12 = vcmp.eq.s32.totalorder %v1662_v17, %v1854_v32 }
  0x64   : > { %1273 = vmatpush1.bf16.msk.msra.mxu1 %vm1272_vm15, %v1458_v16  ;;  %vm1242_vm2 = vmpackc.low %vm310_vm11, %vm306_vm10  ;;  %878 = vmatprep.mubr.bf16.mxu0 %v1457_v1  ;;  %vm320_vm10 = vcmp.eq.s32.totalorder %v1665_v18, %v1845_v31  ;;  %vm315_vm15 = vcmp.eq.s32.totalorder %v1662_v17, %v1863_v33 }
  0x65   : > { %1243 = vmatprep.subr.msk.bf16.mxu0 %vm1242_vm2, %v1458_v16  ;;  %vm1274_vm5 = vmpackc.low %vm312_vm14, %vm308_vm13  ;;  %919 = vmatprep.mubr.bf16.mxu1 %v1457_v1  ;;  %vm317_vm13 = vcmp.eq.s32.totalorder %v1665_v18, %v1854_v32  ;;  %vm322_vm2 = vcmp.eq.s32.totalorder %v1688_v19, %v1836_v30 }
  0x66   : > { %1275 = vmatprep.subr.msk.bf16.mxu1 %vm1274_vm5, %v1458_v16  ;;  %vm1244_vm8 = vmpackc.low %vm309_vm1, %vm305_vm0  ;;  %vm319_vm0 = vcmp.eq.s32.totalorder %v1665_v18, %v1863_v33  ;;  %vm324_vm5 = vcmp.eq.s32.totalorder %v1688_v19, %v1845_v31 }
  0x67   : > { %1245 = vmatpush1.bf16.msk.msra.mxu0 %vm1244_vm8, %v1458_v16  ;;  %vm1276_vm11 = vmpackc.low %vm311_vm4, %vm307_vm3  ;;  %vm326_vm3 = vcmp.eq.s32.totalorder %v1691_v20, %v1836_v30  ;;  %vm321_vm8 = vcmp.eq.s32.totalorder %v1688_v19, %v1854_v32 }
  0x68   : > { %1277 = vmatpush1.bf16.msk.msra.mxu1 %vm1276_vm11, %v1458_v16  ;;  %vm1246_vm14 = vmpackc.low %vm318_vm7, %vm314_vm6  ;;  %vm328_vm6 = vcmp.eq.s32.totalorder %v1691_v20, %v1845_v31  ;;  %vm323_vm11 = vcmp.eq.s32.totalorder %v1688_v19, %v1863_v33 }
  0x69   : > { %1247 = vmatprep.subr.msk.bf16.mxu0 %vm1246_vm14, %v1458_v16  ;;  %vm1278_vm1 = vmpackc.low %vm320_vm10, %vm316_vm9  ;;  %vm325_vm9 = vcmp.eq.s32.totalorder %v1691_v20, %v1854_v32  ;;  %vm330_vm14 = vcmp.eq.s32.totalorder %v1715_v21, %v1836_v30 }
  0x6a   : > { %1279 = vmatprep.subr.msk.bf16.mxu1 %vm1278_vm1, %v1458_v16  ;;  %vm1248_vm4 = vmpackc.low %vm317_vm13, %vm313_vm12  ;;  %vm327_vm12 = vcmp.eq.s32.totalorder %v1691_v20, %v1863_v33  ;;  %vm332_vm1 = vcmp.eq.s32.totalorder %v1715_v21, %v1845_v31 }
  0x6b   : > { %1249 = vmatpush1.bf16.msk.msra.mxu0 %vm1248_vm4, %v1458_v16  ;;  %vm1280_vm7 = vmpackc.low %vm319_vm0, %vm315_vm15  ;;  %vm334_vm15 = vcmp.eq.s32.totalorder %v1718_v22, %v1836_v30  ;;  %vm329_vm4 = vcmp.eq.s32.totalorder %v1715_v21, %v1854_v32 }
  0x6c   : > { %1281 = vmatpush1.bf16.msk.msra.mxu1 %vm1280_vm7, %v1458_v16  ;;  %vm1250_vm10 = vmpackc.low %vm326_vm3, %vm322_vm2  ;;  %vm336_vm2 = vcmp.eq.s32.totalorder %v1718_v22, %v1845_v31  ;;  %vm331_vm7 = vcmp.eq.s32.totalorder %v1715_v21, %v1863_v33 }
  0x6d   : > { %1251 = vmatprep.subr.msk.bf16.mxu0 %vm1250_vm10, %v1458_v16  ;;  %vm1282_vm13 = vmpackc.low %vm328_vm6, %vm324_vm5  ;;  %vm333_vm5 = vcmp.eq.s32.totalorder %v1718_v22, %v1854_v32  ;;  %vm338_vm10 = vcmp.eq.s32.totalorder %v1747_v23, %v1836_v30 }
  0x6e   : > { %1283 = vmatprep.subr.msk.bf16.mxu1 %vm1282_vm13, %v1458_v16  ;;  %vm1252_vm0 = vmpackc.low %vm325_vm9, %vm321_vm8  ;;  %vm335_vm8 = vcmp.eq.s32.totalorder %v1718_v22, %v1863_v33  ;;  %vm340_vm13 = vcmp.eq.s32.totalorder %v1747_v23, %v1845_v31 }
  0x6f   : > { %1253 = vmatpush1.bf16.msk.msra.mxu0 %vm1252_vm0, %v1458_v16  ;;  %vm1284_vm3 = vmpackc.low %vm327_vm12, %vm323_vm11  ;;  %vm342_vm11 = vcmp.eq.s32.totalorder %v1750_v24, %v1836_v30  ;;  %vm337_vm0 = vcmp.eq.s32.totalorder %v1747_v23, %v1854_v32 }
  0x70   : > { %1285 = vmatpush1.bf16.msk.msra.mxu1 %vm1284_vm3, %v1458_v16  ;;  %vm1254_vm6 = vmpackc.low %vm334_vm15, %vm330_vm14  ;;  %vm344_vm14 = vcmp.eq.s32.totalorder %v1750_v24, %v1845_v31  ;;  %vm339_vm3 = vcmp.eq.s32.totalorder %v1747_v23, %v1863_v33 }
  0x71   : > { %1255 = vmatprep.subr.msk.bf16.mxu0 %vm1254_vm6, %v1458_v16  ;;  %vm1286_vm9 = vmpackc.low %vm336_vm2, %vm332_vm1  ;;  %vm341_vm1 = vcmp.eq.s32.totalorder %v1750_v24, %v1854_v32  ;;  %vm346_vm6 = vcmp.eq.s32.totalorder %v1779_v25, %v1836_v30 }
  0x72   : > { %1287 = vmatprep.subr.msk.bf16.mxu1 %vm1286_vm9, %v1458_v16  ;;  %vm1256_vm12 = vmpackc.low %vm333_vm5, %vm329_vm4  ;;  %vm343_vm4 = vcmp.eq.s32.totalorder %v1750_v24, %v1863_v33  ;;  %vm348_vm9 = vcmp.eq.s32.totalorder %v1779_v25, %v1845_v31 }
  0x73   : > { %1257 = vmatpush1.bf16.msk.msra.mxu0 %vm1256_vm12, %v1458_v16  ;;  %vm1288_vm15 = vmpackc.low %vm335_vm8, %vm331_vm7  ;;  %vm350_vm7 = vcmp.eq.s32.totalorder %v1782_v26, %v1836_v30  ;;  %vm345_vm12 = vcmp.eq.s32.totalorder %v1779_v25, %v1854_v32 }
  0x74   : > { %1289 = vmatpush1.bf16.msk.msra.mxu1 %vm1288_vm15, %v1458_v16  ;;  %vm1258_vm2 = vmpackc.low %vm342_vm11, %vm338_vm10  ;;  %vm352_vm10 = vcmp.eq.s32.totalorder %v1782_v26, %v1845_v31  ;;  %vm347_vm15 = vcmp.eq.s32.totalorder %v1779_v25, %v1863_v33 }
  0x75   : > { %1259 = vmatprep.subr.msk.bf16.mxu0 %vm1258_vm2, %v1458_v16  ;;  %vm1290_vm5 = vmpackc.low %vm344_vm14, %vm340_vm13  ;;  %vm349_vm13 = vcmp.eq.s32.totalorder %v1782_v26, %v1854_v32  ;;  %vm354_vm2 = vcmp.eq.s32.totalorder %v1809_v27, %v1836_v30 }
  0x76   : > { %1291 = vmatprep.subr.msk.bf16.mxu1 %vm1290_vm5, %v1458_v16  ;;  %vm1260_vm8 = vmpackc.low %vm341_vm1, %vm337_vm0  ;;  %vm351_vm0 = vcmp.eq.s32.totalorder %v1782_v26, %v1863_v33  ;;  %vm356_vm5 = vcmp.eq.s32.totalorder %v1809_v27, %v1845_v31 }
  0x77   : > { %1261 = vmatpush1.bf16.msk.msra.mxu0 %vm1260_vm8, %v1458_v16  ;;  %vm1292_vm11 = vmpackc.low %vm343_vm4, %vm339_vm3  ;;  %vm358_vm3 = vcmp.eq.s32.totalorder %v1812_v28, %v1836_v30  ;;  %vm353_vm8 = vcmp.eq.s32.totalorder %v1809_v27, %v1854_v32 }
  0x78   : > { %1293 = vmatpush1.bf16.msk.msra.mxu1 %vm1292_vm11, %v1458_v16  ;;  %vm1262_vm14 = vmpackc.low %vm350_vm7, %vm346_vm6  ;;  %vm360_vm6 = vcmp.eq.s32.totalorder %v1812_v28, %v1845_v31  ;;  %vm355_vm11 = vcmp.eq.s32.totalorder %v1809_v27, %v1863_v33 }
  0x79   : > { %1263 = vmatprep.subr.msk.bf16.mxu0 %vm1262_vm14, %v1458_v16  ;;  %vm1294_vm1 = vmpackc.low %vm352_vm10, %vm348_vm9  ;;  %vm357_vm9 = vcmp.eq.s32.totalorder %v1812_v28, %v1854_v32 }
  0x7a   : > { %1295 = vmatprep.subr.msk.bf16.mxu1 %vm1294_vm1, %v1458_v16  ;;  %vm1264_vm4 = vmpackc.low %vm349_vm13, %vm345_vm12  ;;  %vm359_vm12 = vcmp.eq.s32.totalorder %v1812_v28, %v1863_v33 }
  0x7b   : > { %1265 = vmatpush1.bf16.msk.msra.mxu0 %vm1264_vm4, %v1458_v16  ;;  %vm1296_vm7 = vmpackc.low %vm351_vm0, %vm347_vm15 }
  0x7c   : > { %1297 = vmatpush1.bf16.msk.msra.mxu1 %vm1296_vm7, %v1458_v16  ;;  %vm1266_vm10 = vmpackc.low %vm358_vm3, %vm354_vm2 }
  0x7d   : > { %1267 = vmatprep.subr.msk.bf16.mxu0 %vm1266_vm10, %v1458_v16  ;;  %vm1298_vm13 = vmpackc.low %vm360_vm6, %vm356_vm5 }
  0x7e   : > { %1299 = vmatprep.subr.msk.bf16.mxu1 %vm1298_vm13, %v1458_v16  ;;  %vm1268_vm14 = vmpackc.low %vm357_vm9, %vm353_vm8 }
  0x7f   : > { %1269 = vmatpush1.bf16.msk.msra.mxu0 %vm1268_vm14, %v1458_v16  ;;  %vm1300_vm15 = vmpackc.low %vm359_vm12, %vm355_vm11 }
  0x80   : > { %1301 = vmatpush1.bf16.msk.msra.mxu1 %vm1300_vm15, %v1458_v16 }
  0x82   : > { %879 = vmatmul.mubr.bf16.vlgmr.msra.gmra.mrb[4].mxu0 %v762_v35 }
  0x83   : > { %920 = vmatmul.mubr.bf16.vlgmr.msra.gmra.mrb[4].mxu1 %v762_v35 }
  0xb9   : > { %v932_v45 = vpop.permute.xlu0 %931 }
 0x135   : > { %v798_v36 = vpop.f32.mrb[0].mxu0 }
 0x136   : > { %v839_v37 = vpop.f32.mrb[0].mxu1  ;;  %v800_v38 = vpop.f32.mrb[1].mxu0 }
 0x137   : > { %v841_v39 = vpop.f32.mrb[1].mxu1  ;;  %v802_v40 = vpop.f32.mrb[2].mxu0 }
 0x138   : > { %v843_v41 = vpop.f32.mrb[2].mxu1  ;;  %v803_v42 = vpop.f32.mrb[3].mxu0 }
 0x139   : > { %v844_v43 = vpop.f32.mrb[3].mxu1 }
 0x155   : > { %v880_v44 = vpop.f32.mrb[4].mxu0 }
 0x156   : > { %v881_v46 = vadd.f32 %v880_v44, %v798_v36  ;;  %v921_v47 = vpop.f32.mrb[4].mxu1  ;;  %v882_v48 = vpop.f32.mrb[5].mxu0 }
 0x157   : > { %v922_v49 = vadd.f32 %v921_v47, %v839_v37  ;;  %v883_v50 = vadd.f32 %v882_v48, %v800_v38  ;;  %v923_v51 = vpop.f32.mrb[5].mxu1  ;;  %v884_v52 = vpop.f32.mrb[6].mxu0 }
 0x158   : > { %v924_v53 = vadd.f32 %v923_v51, %v841_v39  ;;  %v934_v54 = vadd.f32 %v932_v45, %v881_v46  ;;  %v925_v55 = vpop.f32.mrb[6].mxu1  ;;  %v885_v56 = vpop.f32.mrb[7].mxu0 }
 0x159   : > { %v935_v57 = vadd.f32 %v932_v45, %v883_v50  ;;  %v936_v58 = vadd.f32 %v932_v45, %v922_v49  ;;  %v926_v59 = vpop.f32.mrb[7].mxu1 }
 0x15a   : > { %v937_v60 = vadd.f32 %v932_v45, %v924_v53  ;;  %938 = vst [vmem:[%s254_s23] sm:$0xff] %v934_v54 }
 0x15b   : > { %939 = vst [vmem:[%s254_s23 + $0x8] sm:$0xff] %v935_v57  ;;  %940 = vst [vmem:[%s254_s23 + $0x10] sm:$0xff] %v936_v58 }
 0x15c   : > { %941 = vst [vmem:[%s254_s23 + $0x18] sm:$0xff] %v937_v60 }
 0x15d   : > { %1401 = shalt.err (!%p1398_p5)
}
 0x15e   : > { %s1402_s13 = scalar_lea.hbm %s2042_s14, 512  ;;  %s1406_s9 = scalar_lea.hbm %s2091_s5, 1024 }
 0x15f   : > { %p1403_p8 = scmp.ne.s32.totalorder %s2042_s14, %s1402_s13  ;;  %p1407_p1 = scmp.lt.u32.totalorder %s2042_s14, %s2091_s5 }
 0x160   : > { %p1408_p3 = scmp.lt.u32.totalorder %s1406_s9, %s1402_s13  ;;  %p1410_p11 = scmp.lt.u32.totalorder %s1402_s13, %s2042_s14 }
 0x161   : > { %p1404_p9 = pnand %p1403_p8, %p2101_p12 }
 0x162   : > { %p1409_p6 = por %p1408_p3, %p1407_p1 }
 0x163   : > { %p1405_p0 = pneg %p1404_p9 }
 0x164   : > { %p1411_p13 = por %p1410_p11, %p1409_p6 }
 0x166   : > { %p1412_p7 = pnand %p1411_p13, %p1405_p0 }
 0x168   : > { %1415 = shalt.err (!%p1412_p7)
}
 0x169   : > { %1311 = dma.vmem_to_hbm [thread:$0]  (%p2101_p12), %s2044_s25, 512, %s2042_s14, %s943_s22  }
 0x16a PF: > { %s969_s17 = sand.u32 1, %s1442_s18   ;;  %p2102_p10 = scmp.ne.s32.totalorder %s2096_s6, 0 }
 0x16b   : > { %p2103_p2 = scmp.ge.s32.totalorder %s1454_s21, 2  ;;  %s970_s23 = scalar_lea.sflag [#allocation4], %s969_s17 }
 0x16d   : > { %p1318_p4 = pnand %p2103_p2, %p2102_p10 }
 0x16f   : > { %1437 = dma.done.wait (!%p1318_p4), %s970_s23, 512  }
 0x170   : > { %1439 = vsyncadd (!%p1318_p4), %s970_s23, 4294966784  ;;  %p18_p5 = scmp.ge.s32.totalorder %s1515_s24, 4   ;;  %s2104_s18 = smov %s1446_s19 }
 0x171   : > { %s2105_s19 = smov %s1450_s20  ;;  %s2106_s20 = smov %s1527_s27 }
 0x172   : > { %s2107_s21 = smov %s1515_s24  ;;  %20 = sbr.rel (!%p18_p5) target bundleno = 5 (0x5), region = 88 }
 0x179   :  { %975 = vsyncpa [#allocation3], 1 }
 0x17a   :  { %977 = vsyncpa [#allocation3 + $0x1], 1 }
 0x17b   :  { %978 = vsyncpa [#allocation4], 1 }
 0x17c   :  { %980 = vsyncpa [#allocation4 + $0x1], 1 }

</bundles_post_ra>
